<compile_context>
chip_gen: v7x
topology: tpu7x:2x2x1
jax: 0.10.0
libtpu: 0.0.40
codegen_flags: <defaults>
</compile_context>

<pallas_src>
from functools import partial

import jax
import jax.numpy as jnp
from jax import lax
from jax.experimental import pallas as pl
from jax.experimental.pallas import tpu as pltpu


def _sublanes(dtype):
    # Native sublane tile height for a dtype (f32: 8, bf16: 16, int8/fp8: 32).
    return {4: 8, 2: 16, 1: 32}[jnp.dtype(dtype).itemsize]


def _default_block_batch(n):
    """Largest divisor of n that still leaves >= 2 grid steps (v7x has two
    TensorCores); n itself only when n == 1."""
    if n == 1:
        return 1
    best = 1
    for d in range(2, n // 2 + 1):
        if n % d == 0:
            best = d
    return best


def residual_kernel(x_ref, w1_ref, w2_ref, edge_ref, o_ref, xbuf_ref, rhs_ref, *,
                    H, W, cin, cout, c_pad, pad, bblk, skip):
    # x_ref   : (bblk, Cin, H*W)            input images, spatial flattened
    # w1_ref  : (Cout, 9*c_pad)             3x3 weights, col = (kh*3+kw)*c_pad+ci
    # w2_ref  : (Cout, Cout)                1x1 weights
    # edge_ref: (2, H*W)                    row0: (x>0), row1: (x<W-1) as 0/1
    # o_ref   : (bblk, Cout, H*W)
    # xbuf_ref: (c_pad, bblk*(H*W+2*pad))   per-image zero-halo staging buffer
    # rhs_ref : (9*c_pad, bblk*H*W)         one-shot im2col slab
    HW = H * W
    seg = HW + 2 * pad
    cdtype = rhs_ref.dtype

    # Stage every image of this step into the interior of its padded segment.
    # Halos and channel-pad rows are (re)zeroed every step (see header note on
    # megacore-safety of scratch init); cost is negligible.
    for b in range(bblk):
        base = b * seg
        xbuf_ref[:, base:base + pad] = jnp.zeros((c_pad, pad), cdtype)
        xbuf_ref[:, base + pad + HW:base + seg] = jnp.zeros((c_pad, pad), cdtype)
        if c_pad > cin:
            xbuf_ref[cin:, base + pad:base + pad + HW] = (
                jnp.zeros((c_pad - cin, HW), cdtype))
        xbuf_ref[:cin, base + pad:base + pad + HW] = x_ref[b].astype(cdtype)

    # Horizontal edge masks, hoisted out of the 9-tap loop.  No vertical mask
    # is needed: for every in-range x the vertically out-of-range taps land in
    # the zero halo; the dx==0 taps need no mask at all.
    lmask = edge_ref[0:1, :]          # (1, HW): 1 where x > 0     (dx = -1 taps)
    rmask = edge_ref[1:2, :]          # (1, HW): 1 where x < W-1   (dx = +1 taps)

    # Build the im2col slab: row block t = kh*3+kw holds the input shifted by
    # (dy, dx) = (kh-1, kw-1).  Every tap write is a full-sublane-tile
    # (unmasked) store; channel-pad rows are zero so they add nothing.
    for kh in range(3):
        for kw in range(3):
            t = kh * 3 + kw
            dy, dx = kh - 1, kw - 1
            off = dy * W + dx
            for b in range(bblk):
                src = b * seg + pad + off
                shifted = xbuf_ref[:, src:src + HW]           # (c_pad, HW)
                if dx == -1:
                    shifted = shifted * lmask
                elif dx == 1:
                    shifted = shifted * rmask
                rhs_ref[t * c_pad:(t + 1) * c_pad, b * HW:(b + 1) * HW] = shifted

    # 3x3 conv == ONE MXU matmul over all images: K = 9*c_pad, N = bblk*H*W.
    h = jnp.dot(w1_ref[...], rhs_ref[...], preferred_element_type=jnp.float32)
    h = jnp.maximum(h, 0.0).astype(cdtype)
    # 1x1 conv == (Cout, Cout) @ (Cout, bblk*H*W), f32 accumulation.
    out = jnp.dot(w2_ref[...], h, preferred_element_type=jnp.float32)

    # Per-image writeback: lane-dense, unmasked stores.
    for b in range(bblk):
        ob = out[:, b * HW:(b + 1) * HW]
        if skip:
            ob = ob + x_ref[b].astype(jnp.float32)
        o_ref[b] = ob.astype(o_ref.dtype)


def residual_layer(x_nchw, w1_oihw, w2_oihw, *, skip=False, compute_dtype=None,
                   block_batch=None):
    """Pallas implementation of ResidualLayer.forward (kernel=3, stride=1, pad=1).

    x_nchw : (N, Cin, H, W)      PyTorch-layout input
    w1_oihw: (Cout, Cin, 3, 3)   first conv weight (OIHW)
    w2_oihw: (Cout, Cout, 1, 1)  second conv weight
    compute_dtype : dtype for slab / staging / weights (default: x.dtype);
                    bf16 halves slab traffic; matmuls always accumulate in f32.
    returns: (N, Cout, H, W) in x.dtype
    """
    N, Cin, H, W = x_nchw.shape
    Cout, Cin_w, KH, KW = w1_oihw.shape
    assert (KH, KW) == (3, 3) and Cin_w == Cin
    assert w2_oihw.shape == (Cout, Cout, 1, 1)
    if skip and Cin != Cout:
        raise ValueError("skip=True requires in_channels == out_channels")

    cdtype = jnp.dtype(compute_dtype) if compute_dtype is not None else x_nchw.dtype
    HW = H * W
    # Halo: >= W+1 (largest 3x3 tap shift), rounded to a lane multiple so every
    # image's interior copy lands at an aligned offset.
    PAD = ((W + 1 + 127) // 128) * 128
    # Round each im2col tap block up to a full sublane tile so all tap writes
    # are unmasked full-tile stores (8 rows f32, 16 rows bf16).
    sub = _sublanes(cdtype)
    c_pad = ((Cin + sub - 1) // sub) * sub

    if block_batch is None:
        B = _default_block_batch(N)
    else:
        B = int(block_batch)
        if N % B != 0:
            raise ValueError("block_batch must divide the batch size")
    G = N // B

    # Free, contiguous reshape -- no transpose, no padded HBM copy of x.
    x_flat = x_nchw.reshape(N, Cin, HW)
    # (Cout,Cin,3,3) -> (Cout,3,3,Cin) -> zero-pad Cin to c_pad -> (Cout, 9*c_pad).
    w1_mat = jnp.pad(jnp.transpose(w1_oihw, (0, 2, 3, 1)),
                     ((0, 0), (0, 0), (0, 0), (0, c_pad - Cin)))
    w1_mat = w1_mat.reshape(Cout, 9 * c_pad).astype(cdtype)
    w2_mat = w2_oihw[:, :, 0, 0].astype(cdtype)                  # (Cout, Cout)
    # Exact horizontal-edge masks (integer arange; no float-reciprocal trick).
    col = jnp.arange(HW, dtype=jnp.int32) % W
    edge = jnp.stack([(col > 0), (col < W - 1)]).astype(cdtype)  # (2, HW)

    kern = partial(residual_kernel, H=H, W=W, cin=Cin, cout=Cout,
                   c_pad=c_pad, pad=PAD, bblk=B, skip=skip)

    # Explicit VMEM budget: double-buffered blocks + scratch + matmul temps.
    isz = jnp.dtype(x_nchw.dtype).itemsize
    csz = jnp.dtype(cdtype).itemsize
    vmem_bytes = (
        2 * (B * Cin * HW * isz + B * Cout * HW * isz
             + Cout * 9 * c_pad * csz + Cout * Cout * csz + 2 * HW * csz)
        + c_pad * B * (HW + 2 * PAD) * csz          # zero-halo staging scratch
        + 9 * c_pad * B * HW * csz                  # im2col slab scratch
        + 4 * Cout * B * HW * 4)                    # f32 matmul temporaries
    vmem_limit = int(min(max(2 * vmem_bytes + (4 << 20), 32 << 20), 100 << 20))

    # TODO(synk): for production VQ-VAE shapes (C>=128, H=W>=64) add a row-tiled
    # spatial grid axis with a 1-row halo so the slab fits v7x's 64 MiB VMEM.
    out_flat = pl.pallas_call(
        kern,
        out_shape=jax.ShapeDtypeStruct((N, Cout, HW), x_nchw.dtype),
        grid=(G,),
        in_specs=[
            pl.BlockSpec((B, Cin, HW), lambda g: (g, 0, 0)),
            pl.BlockSpec((Cout, 9 * c_pad), lambda g: (0, 0)),
            pl.BlockSpec((Cout, Cout), lambda g: (0, 0)),
            pl.BlockSpec((2, HW), lambda g: (0, 0)),
        ],
        out_specs=pl.BlockSpec((B, Cout, HW), lambda g: (g, 0, 0)),
        scratch_shapes=[
            pltpu.VMEM((c_pad, B * (HW + 2 * PAD)), cdtype),   # zero-halo staging
            pltpu.VMEM((9 * c_pad, B * HW), cdtype),           # im2col slab
        ],
        compiler_params=pltpu.CompilerParams(
            dimension_semantics=("parallel",),
            vmem_limit_bytes=vmem_limit),
    )(x_flat, w1_mat, w2_mat, edge)

    return out_flat.reshape(N, Cout, H, W)


def residual_layer_ref(x_nchw, w1_oihw, w2_oihw, *, skip=False):
    """Pure-JAX reference (lax conv) matching the PyTorch semantics."""
    dn = lax.conv_dimension_numbers(x_nchw.shape, w1_oihw.shape,
                                    ("NCHW", "OIHW", "NCHW"))
    h = lax.conv_general_dilated(x_nchw, w1_oihw, (1, 1), ((1, 1), (1, 1)),
                                 dimension_numbers=dn)
    h = jnp.maximum(h, 0.0)
    dn2 = lax.conv_dimension_numbers(h.shape, w2_oihw.shape,
                                     ("NCHW", "OIHW", "NCHW"))
    out = lax.conv_general_dilated(h, w2_oihw, (1, 1), ((0, 0), (0, 0)),
                                   dimension_numbers=dn2)
    return x_nchw + out if skip else out


if __name__ == "__main__":
    key = jax.random.PRNGKey(0)
    kx, kw1, kw2, kx2, kw3, kw4, kx3 = jax.random.split(key, 7)

    # ---- config 1: skip=False, Cin != Cout, f32 ------------------------
    N, Cin, Cout, H, W = 2, 4, 8, 16, 16
    x = jax.random.normal(kx, (N, Cin, H, W), dtype=jnp.float32)
    b1 = 1.0 / jnp.sqrt(Cin * 3 * 3)
    w1 = jax.random.uniform(kw1, (Cout, Cin, 3, 3), jnp.float32, -b1, b1)
    b2 = 1.0 / jnp.sqrt(Cout * 1 * 1)
    w2 = jax.random.uniform(kw2, (Cout, Cout, 1, 1), jnp.float32, -b2, b2)

    y = jax.block_until_ready(residual_layer(x, w1, w2, skip=False))
    y_ref = residual_layer_ref(x, w1, w2, skip=False)
    assert y.shape == (N, Cout, H, W)
    assert jnp.allclose(y, y_ref, rtol=1e-4, atol=1e-4), "mismatch (skip=False)"

    # ---- config 2: skip=True, Cin == Cout, f32 -------------------------
    C = 8
    x2 = jax.random.normal(kx2, (N, C, H, W), dtype=jnp.float32)
    b3 = 1.0 / jnp.sqrt(C * 3 * 3)
    w3 = jax.random.uniform(kw3, (C, C, 3, 3), jnp.float32, -b3, b3)
    b4 = 1.0 / jnp.sqrt(C * 1 * 1)
    w4 = jax.random.uniform(kw4, (C, C, 1, 1), jnp.float32, -b4, b4)

    y2 = jax.block_until_ready(residual_layer(x2, w3, w4, skip=True))
    y2_ref = residual_layer_ref(x2, w3, w4, skip=True)
    assert jnp.allclose(y2, y2_ref, rtol=1e-4, atol=1e-4), "mismatch (skip=True)"

    # ---- config 3: batch-blocked (4 images / grid step) + bf16 slab ----
    N3 = 8
    x3 = jax.random.normal(kx3, (N3, C, H, W), dtype=jnp.float32)
    y3 = jax.block_until_ready(
        residual_layer(x3, w3, w4, skip=True, compute_dtype=jnp.bfloat16))
    y3_ref = residual_layer_ref(x3, w3, w4, skip=True)
    assert jnp.allclose(y3, y3_ref, rtol=5e-2, atol=5e-2), "mismatch (bf16)"

    print("KERNEL_OK")
</pallas_src>

<mosaic_0001>
module attributes {stable_mosaic.version = 11 : i64} {
  func.func @residual_kernel(%arg0: i32, %arg1: memref<1x4x256xf32, #tpu.memory_space<vmem>>, %arg2: memref<8x72xf32, #tpu.memory_space<vmem>>, %arg3: memref<8x8xf32, #tpu.memory_space<vmem>>, %arg4: memref<2x256xf32, #tpu.memory_space<vmem>>, %arg5: memref<1x8x256xf32, #tpu.memory_space<vmem>>, %arg6: memref<8x512xf32, #tpu.memory_space<vmem>>, %arg7: memref<72x256xf32, #tpu.memory_space<vmem>>) attributes {dimension_semantics = [#tpu.dimension_semantics<parallel>], iteration_bounds = array<i64: 2>, scalar_prefetch = 0 : i64, scratch_operands = 2 : i64, tpu.core_type = #tpu.core_type<tc>, window_params = [{transform_indices = @transform_0, window_bounds = array<i64: 1, 4, 256>}, {pipeline_mode = #tpu.pipeline_mode<synchronous>, transform_indices = @transform_1, window_bounds = array<i64: 8, 72>}, {pipeline_mode = #tpu.pipeline_mode<synchronous>, transform_indices = @transform_2, window_bounds = array<i64: 8, 8>}, {pipeline_mode = #tpu.pipeline_mode<synchronous>, transform_indices = @transform_3, window_bounds = array<i64: 2, 256>}, {transform_indices = @transform_4, window_bounds = array<i64: 1, 8, 256>}]} {
    %cst = arith.constant 0.000000e+00 : f32
    %0 = vector.broadcast %cst : f32 to vector<8x128xf32>
    %c0 = arith.constant 0 : index
    %c0_0 = arith.constant 0 : index
    %1 = vector.load %arg6[%c0, %c0_0] : memref<8x512xf32, #tpu.memory_space<vmem>>, vector<8x128xf32>
    tpu.vector_store %arg6[%c0, %c0_0], %0 {strides = array<i32>} : memref<8x512xf32, #tpu.memory_space<vmem>>, vector<8x128xf32>,
    %cst_1 = arith.constant 0.000000e+00 : f32
    %2 = vector.broadcast %cst_1 : f32 to vector<8x128xf32>
    %c0_2 = arith.constant 0 : index
    %c384 = arith.constant 384 : index
    %3 = vector.load %arg6[%c0_2, %c384] : memref<8x512xf32, #tpu.memory_space<vmem>>, vector<8x128xf32>
    tpu.vector_store %arg6[%c0_2, %c384], %2 {strides = array<i32>} : memref<8x512xf32, #tpu.memory_space<vmem>>, vector<8x128xf32>,
    %cst_3 = arith.constant 0.000000e+00 : f32
    %4 = vector.broadcast %cst_3 : f32 to vector<4x256xf32>
    %c4 = arith.constant 4 : index
    %c128 = arith.constant 128 : index
    %5 = vector.load %arg6[%c4, %c128] : memref<8x512xf32, #tpu.memory_space<vmem>>, vector<4x256xf32>
    tpu.vector_store %arg6[%c4, %c128], %4 {strides = array<i32>} : memref<8x512xf32, #tpu.memory_space<vmem>>, vector<4x256xf32>,
    %c0_4 = arith.constant 0 : index
    %c0_5 = arith.constant 0 : index
    %c0_6 = arith.constant 0 : index
    %6 = vector.load %arg1[%c0_4, %c0_5, %c0_6] : memref<1x4x256xf32, #tpu.memory_space<vmem>>, vector<1x4x256xf32>
    %7 = vector.shape_cast %6 : vector<1x4x256xf32> to vector<4x256xf32>
    %c0_7 = arith.constant 0 : index
    %c128_8 = arith.constant 128 : index
    %8 = vector.load %arg6[%c0_7, %c128_8] : memref<8x512xf32, #tpu.memory_space<vmem>>, vector<4x256xf32>
    tpu.vector_store %arg6[%c0_7, %c128_8], %7 {strides = array<i32>} : memref<8x512xf32, #tpu.memory_space<vmem>>, vector<4x256xf32>,
    %c0_9 = arith.constant 0 : index
    %c0_10 = arith.constant 0 : index
    %9 = vector.load %arg4[%c0_9, %c0_10] : memref<2x256xf32, #tpu.memory_space<vmem>>, vector<1x256xf32>
    %c1 = arith.constant 1 : index
    %c0_11 = arith.constant 0 : index
    %10 = vector.load %arg4[%c1, %c0_11] : memref<2x256xf32, #tpu.memory_space<vmem>>, vector<1x256xf32>
    %c0_12 = arith.constant 0 : index
    %c111 = arith.constant 111 : index
    %11 = vector.load %arg6[%c0_12, %c111] : memref<8x512xf32, #tpu.memory_space<vmem>>, vector<8x256xf32>
    %12 = vector.broadcast %9 : vector<1x256xf32> to vector<8x256xf32>
    %13 = arith.mulf %11, %12 : vector<8x256xf32>
    %c0_13 = arith.constant 0 : index
    %c0_14 = arith.constant 0 : index
    %14 = vector.load %arg7[%c0_13, %c0_14] : memref<72x256xf32, #tpu.memory_space<vmem>>, vector<8x256xf32>
    tpu.vector_store %arg7[%c0_13, %c0_14], %13 {strides = array<i32>} : memref<72x256xf32, #tpu.memory_space<vmem>>, vector<8x256xf32>,
    %c0_15 = arith.constant 0 : index
    %c112 = arith.constant 112 : index
    %15 = vector.load %arg6[%c0_15, %c112] : memref<8x512xf32, #tpu.memory_space<vmem>>, vector<8x256xf32>
    %c8 = arith.constant 8 : index
    %c0_16 = arith.constant 0 : index
    %16 = vector.load %arg7[%c8, %c0_16] : memref<72x256xf32, #tpu.memory_space<vmem>>, vector<8x256xf32>
    tpu.vector_store %arg7[%c8, %c0_16], %15 {strides = array<i32>} : memref<72x256xf32, #tpu.memory_space<vmem>>, vector<8x256xf32>,
    %c0_17 = arith.constant 0 : index
    %c113 = arith.constant 113 : index
    %17 = vector.load %arg6[%c0_17, %c113] : memref<8x512xf32, #tpu.memory_space<vmem>>, vector<8x256xf32>
    %18 = vector.broadcast %10 : vector<1x256xf32> to vector<8x256xf32>
    %19 = arith.mulf %17, %18 : vector<8x256xf32>
    %c16 = arith.constant 16 : index
    %c0_18 = arith.constant 0 : index
    %20 = vector.load %arg7[%c16, %c0_18] : memref<72x256xf32, #tpu.memory_space<vmem>>, vector<8x256xf32>
    tpu.vector_store %arg7[%c16, %c0_18], %19 {strides = array<i32>} : memref<72x256xf32, #tpu.memory_space<vmem>>, vector<8x256xf32>,
    %c0_19 = arith.constant 0 : index
    %c127 = arith.constant 127 : index
    %21 = vector.load %arg6[%c0_19, %c127] : memref<8x512xf32, #tpu.memory_space<vmem>>, vector<8x256xf32>
    %22 = vector.broadcast %9 : vector<1x256xf32> to vector<8x256xf32>
    %23 = arith.mulf %21, %22 : vector<8x256xf32>
    %c24 = arith.constant 24 : index
    %c0_20 = arith.constant 0 : index
    %24 = vector.load %arg7[%c24, %c0_20] : memref<72x256xf32, #tpu.memory_space<vmem>>, vector<8x256xf32>
    tpu.vector_store %arg7[%c24, %c0_20], %23 {strides = array<i32>} : memref<72x256xf32, #tpu.memory_space<vmem>>, vector<8x256xf32>,
    %c0_21 = arith.constant 0 : index
    %c128_22 = arith.constant 128 : index
    %25 = vector.load %arg6[%c0_21, %c128_22] : memref<8x512xf32, #tpu.memory_space<vmem>>, vector<8x256xf32>
    %c32 = arith.constant 32 : index
    %c0_23 = arith.constant 0 : index
    %26 = vector.load %arg7[%c32, %c0_23] : memref<72x256xf32, #tpu.memory_space<vmem>>, vector<8x256xf32>
    tpu.vector_store %arg7[%c32, %c0_23], %25 {strides = array<i32>} : memref<72x256xf32, #tpu.memory_space<vmem>>, vector<8x256xf32>,
    %c0_24 = arith.constant 0 : index
    %c129 = arith.constant 129 : index
    %27 = vector.load %arg6[%c0_24, %c129] : memref<8x512xf32, #tpu.memory_space<vmem>>, vector<8x256xf32>
    %28 = vector.broadcast %10 : vector<1x256xf32> to vector<8x256xf32>
    %29 = arith.mulf %27, %28 : vector<8x256xf32>
    %c40 = arith.constant 40 : index
    %c0_25 = arith.constant 0 : index
    %30 = vector.load %arg7[%c40, %c0_25] : memref<72x256xf32, #tpu.memory_space<vmem>>, vector<8x256xf32>
    tpu.vector_store %arg7[%c40, %c0_25], %29 {strides = array<i32>} : memref<72x256xf32, #tpu.memory_space<vmem>>, vector<8x256xf32>,
    %c0_26 = arith.constant 0 : index
    %c143 = arith.constant 143 : index
    %31 = vector.load %arg6[%c0_26, %c143] : memref<8x512xf32, #tpu.memory_space<vmem>>, vector<8x256xf32>
    %32 = vector.broadcast %9 : vector<1x256xf32> to vector<8x256xf32>
    %33 = arith.mulf %31, %32 : vector<8x256xf32>
    %c48 = arith.constant 48 : index
    %c0_27 = arith.constant 0 : index
    %34 = vector.load %arg7[%c48, %c0_27] : memref<72x256xf32, #tpu.memory_space<vmem>>, vector<8x256xf32>
    tpu.vector_store %arg7[%c48, %c0_27], %33 {strides = array<i32>} : memref<72x256xf32, #tpu.memory_space<vmem>>, vector<8x256xf32>,
    %c0_28 = arith.constant 0 : index
    %c144 = arith.constant 144 : index
    %35 = vector.load %arg6[%c0_28, %c144] : memref<8x512xf32, #tpu.memory_space<vmem>>, vector<8x256xf32>
    %c56 = arith.constant 56 : index
    %c0_29 = arith.constant 0 : index
    %36 = vector.load %arg7[%c56, %c0_29] : memref<72x256xf32, #tpu.memory_space<vmem>>, vector<8x256xf32>
    tpu.vector_store %arg7[%c56, %c0_29], %35 {strides = array<i32>} : memref<72x256xf32, #tpu.memory_space<vmem>>, vector<8x256xf32>,
    %c0_30 = arith.constant 0 : index
    %c145 = arith.constant 145 : index
    %37 = vector.load %arg6[%c0_30, %c145] : memref<8x512xf32, #tpu.memory_space<vmem>>, vector<8x256xf32>
    %38 = vector.broadcast %10 : vector<1x256xf32> to vector<8x256xf32>
    %39 = arith.mulf %37, %38 : vector<8x256xf32>
    %c64 = arith.constant 64 : index
    %c0_31 = arith.constant 0 : index
    %40 = vector.load %arg7[%c64, %c0_31] : memref<72x256xf32, #tpu.memory_space<vmem>>, vector<8x256xf32>
    tpu.vector_store %arg7[%c64, %c0_31], %39 {strides = array<i32>} : memref<72x256xf32, #tpu.memory_space<vmem>>, vector<8x256xf32>,
    %c0_32 = arith.constant 0 : index
    %c0_33 = arith.constant 0 : index
    %41 = vector.load %arg2[%c0_32, %c0_33] : memref<8x72xf32, #tpu.memory_space<vmem>>, vector<8x72xf32>
    %c0_34 = arith.constant 0 : index
    %c0_35 = arith.constant 0 : index
    %42 = vector.load %arg7[%c0_34, %c0_35] : memref<72x256xf32, #tpu.memory_space<vmem>>, vector<72x256xf32>
    %cst_36 = arith.constant dense<0.000000e+00> : vector<8x256xf32>
    %43 = tpu.matmul %41, %42, %cst_36 {dimension_numbers = #tpu.dot_dimension_numbers<[1], [0], [0], [1], [0, 0, 1, 1], [], []>} : vector<8x72xf32>, vector<72x256xf32>, vector<8x256xf32> -> vector<8x256xf32>
    %cst_37 = arith.constant 0.000000e+00 : f32
    %44 = vector.broadcast %cst_37 : f32 to vector<8x256xf32>
    %45 = arith.maximumf %43, %44 : vector<8x256xf32>
    %c0_38 = arith.constant 0 : index
    %c0_39 = arith.constant 0 : index
    %46 = vector.load %arg3[%c0_38, %c0_39] : memref<8x8xf32, #tpu.memory_space<vmem>>, vector<8x8xf32>
    %cst_40 = arith.constant dense<0.000000e+00> : vector<8x256xf32>
    %47 = tpu.matmul %46, %45, %cst_40 {dimension_numbers = #tpu.dot_dimension_numbers<[1], [0], [0], [1], [0, 0, 1, 1], [], []>} : vector<8x8xf32>, vector<8x256xf32>, vector<8x256xf32> -> vector<8x256xf32>
    %c0_41 = arith.constant 0 : index
    %c0_42 = arith.constant 0 : index
    %c0_43 = arith.constant 0 : index
    %48 = vector.load %arg5[%c0_41, %c0_42, %c0_43] : memref<1x8x256xf32, #tpu.memory_space<vmem>>, vector<1x8x256xf32>
    %49 = vector.shape_cast %48 : vector<1x8x256xf32> to vector<8x256xf32>
    %50 = vector.shape_cast %47 : vector<8x256xf32> to vector<1x8x256xf32>
    tpu.vector_store %arg5[%c0_41, %c0_42, %c0_43], %50 {strides = array<i32>} : memref<1x8x256xf32, #tpu.memory_space<vmem>>, vector<1x8x256xf32>,
    return
  }
  func.func @transform_0(%arg0: i32) -> (i32, i32, i32) {
    %c0_i32 = arith.constant 0 : i32
    %c0_i32_0 = arith.constant 0 : i32
    %c0_i32_1 = arith.constant 0 : i32
    return %arg0, %c0_i32, %c0_i32_0 : i32, i32, i32
  }
  func.func @transform_1(%arg0: i32) -> (i32, i32) {
    %c0_i32 = arith.constant 0 : i32
    %c0_i32_0 = arith.constant 0 : i32
    %c0_i32_1 = arith.constant 0 : i32
    return %c0_i32, %c0_i32_0 : i32, i32
  }
  func.func @transform_2(%arg0: i32) -> (i32, i32) {
    %c0_i32 = arith.constant 0 : i32
    %c0_i32_0 = arith.constant 0 : i32
    %c0_i32_1 = arith.constant 0 : i32
    return %c0_i32, %c0_i32_0 : i32, i32
  }
  func.func @transform_3(%arg0: i32) -> (i32, i32) {
    %c0_i32 = arith.constant 0 : i32
    %c0_i32_0 = arith.constant 0 : i32
    %c0_i32_1 = arith.constant 0 : i32
    return %c0_i32, %c0_i32_0 : i32, i32
  }
  func.func @transform_4(%arg0: i32) -> (i32, i32, i32) {
    %c0_i32 = arith.constant 0 : i32
    %c0_i32_0 = arith.constant 0 : i32
    %c0_i32_1 = arith.constant 0 : i32
    return %arg0, %c0_i32, %c0_i32_0 : i32, i32, i32
  }
}

</mosaic_0001>

<bundles_post_ra>
// kernel: tpu_custom_call.1
= control target key start
LH: loop header
LB: loop body
LE: loop exit
PB: predicated region body
PF: predicated region fallthrough
CT: control target
= control target key end

     0   :  { %9 = vsyncpa [#allocation5], 0  ;;  %s1420_s0 = inlined_call_operand.hbm [shape: f32[2,4,256], index: 0, kind: input, shape index: {}]   ;;  %s1421_s1 = inlined_call_operand.hbm [shape: f32[8,72], index: 1, kind: input, shape index: {}]   ;;  %s1422_s2 = inlined_call_operand.hbm [shape: f32[8,8], index: 2, kind: input, shape index: {}]   ;;  %s1423_s3 = inlined_call_operand.vmem [shape: f32[2,256], index: 3, kind: input, shape index: {}]   ;;  %s1424_s4 = inlined_call_operand.hbm [shape: f32[2,8,256], index: 4, kind: output, shape index: {}]  }
   0x1   :  { %11 = vsyncpa [#allocation5 + $0x1], 0 }
   0x2   :  { %12 = vsyncpa [#allocation8], 0 }
   0x3   :  { %13 = vsyncpa [#allocation6], 0 }
   0x4   :  { %15 = vsyncpa [#allocation6 + $0x1], 0  ;;  %s1117_s15 = smov 0   ;;  %s1119_s16 = smov 0  }
   0x5   :  { %s1121_s17 = smov 0   ;;  %s1123_s18 = smov 0  }
   0x6 LB: > { %s1138_s19 = sadd.s32 4294967295, %s1077_s18   ;;  %s770_s20 = sadd.s32 4294967294, %s1077_s18   ;;  %s1077_s18 = sphi %s1123_s18, %s1444_s18   ;;  %s1073_s17 = sphi %s1121_s17, %s1443_s17   ;;  %s1069_s16 = sphi %s1119_s16, %s1442_s16   ;;  %s1065_s15 = sphi %s1117_s15, %s1441_s15  }
   0x7   : > { %p41_p0 = scmp.ne.s32.totalorder %s1069_s16, %s1065_s15  ;;  %p1425_p1 = scmp.eq.s32.totalorder %s1138_s19, 0 }
   0x8   : > { %p134_p3 = scmp.eq.s32.totalorder %s770_s20, 1  ;;  %p771_p5 = scmp.ge.s32.totalorder %s1077_s18, 1 }
   0x9   : > { %p1147_p4 = por %p1425_p1, %p41_p0  ;;  %p141_p7 = scmp.lt.s32.totalorder %s1077_s18, 3 }
   0xa   : > { %p1152_p6 = por %p134_p3, %p41_p0  ;;  %s1079_s24 = smov [#allocation7]  }
   0xb   : > { %s1428_s21 = scalar_select %p1147_p4, 1, 0 }
   0xc   : > { %s1429_s22 = scalar_select %p1152_p6, 1, 0 }
   0xd   : > { %p1157_p8 = pnand %p771_p5, %p141_p7  ;;  %s154_s25 = sshll.u32 %s1079_s24, 4  ;;  %s155_s25 = int_to_ptr.vmem [resolvable:$true] %s154_s25 }
   0xe   : > { %s1080_s26 = smov [#allocation9]   ;;  %s1173_s29 = sadd.s32 1, %s1077_s18  }
   0xf   : > { %s1430_s23 = scalar_select %p1157_p8, 1, 0 }
  0x10   : > { %p821_p10 = pneg %p1157_p8  ;;  %s165_s27 = sshll.u32 %s1080_s26, 4  ;;  %s1170_s27 = int_to_ptr.vmem [resolvable:$true] %s165_s27 }
  0x11   : > { %s25_s30 = ssub.s32 %s1077_s18, %s1173_s29  ;;  %s921_s7 = scalar_lea.hbm %s1421_s1, 128 }
  0x12   : > { %p1166_p11 = pnand %p821_p10, %p1425_p1  ;;  %p922_p12 = scmp.ne.s32.totalorder %s1421_s1, %s921_s7 }
  0x13   : > { %p928_p5 = scmp.lt.u32.totalorder %s921_s7, %s1421_s1 }
  0x14   : > { %p923_p13 = pneg %p1166_p11 }
  0x16   : > { %p924_p0 = pnand %p923_p13, %p922_p12 }
  0x18   : > { %p925_p3 = pneg %p924_p0 }
  0x1a   : > { %p930_p7 = pnand %p928_p5, %p925_p3 }
  0x1c   : > { %933 = shalt.err (!%p930_p7)
}
  0x1d   : > { %s934_s12 = scalar_lea.vmem %s155_s25, 128  ;;  %p942_p2 = scmp.lt.s32.totalorder %s155_s25, %s155_s25 }
  0x1e   : > { %p935_p10 = scmp.ne.s32.totalorder %s155_s25, %s934_s12  ;;  %p943_p6 = scmp.lt.s32.totalorder %s934_s12, %s934_s12 }
  0x20   : > { %p937_p9 = pnand %p935_p10, %p923_p13  ;;  %p944_p4 = por %p943_p6, %p942_p2 }
  0x22   : > { %p938_p1 = pneg %p937_p9 }
  0x24   : > { %p945_p8 = pnand %p944_p4, %p938_p1 }
  0x26   : > { %948 = shalt.err (!%p945_p8)
}
  0x27   : > { %824 = dma.hbm_to_vmem [thread:$0]  (!%p1166_p11), %s1421_s1, 128, %s155_s25, [#allocation8]  }
  0x28   : > { %s949_s26 = scalar_lea.hbm %s1422_s2, 128 }
  0x29   : > { %p950_p9 = scmp.ne.s32.totalorder %s1422_s2, %s949_s26  ;;  %p956_p4 = scmp.lt.u32.totalorder %s949_s26, %s1422_s2 }
  0x2b   : > { %p952_p2 = pnand %p950_p9, %p923_p13 }
  0x2d   : > { %p953_p1 = pneg %p952_p2 }
  0x2f   : > { %p958_p6 = pnand %p956_p4, %p953_p1 }
  0x31   : > { %961 = shalt.err (!%p958_p6)
}
  0x32   : > { %s962_s25 = scalar_lea.vmem %s1170_s27, 128  ;;  %p970_p3 = scmp.lt.s32.totalorder %s1170_s27, %s1170_s27 }
  0x33   : > { %p963_p8 = scmp.ne.s32.totalorder %s1170_s27, %s962_s25  ;;  %p971_p5 = scmp.lt.s32.totalorder %s962_s25, %s962_s25 }
  0x35   : > { %p965_p12 = pnand %p963_p8, %p923_p13  ;;  %p972_p7 = por %p971_p5, %p970_p3 }
  0x37   : > { %p966_p0 = pneg %p965_p12 }
  0x39   : > { %p973_p10 = pnand %p972_p7, %p966_p0 }
  0x3b   : > { %976 = shalt.err (!%p973_p10)
}
  0x3c   : > { %827 = dma.hbm_to_vmem [thread:$0]  (!%p1166_p11), %s1422_s2, 128, %s1170_s27, [#allocation8]  }
  0x3d   : > { %p26_p13 = scmp.eq.s32.totalorder %s25_s30, 0  ;;  %s28_s11 = sadd.s32 1, %s1073_s17 }
  0x3e   : > { %p35_p9 = scmp.ne.s32.totalorder %s1073_s17, %s1069_s16  ;;  %p36_p2 = scmp.eq.s32.totalorder %s1077_s18, 0 }
  0x3f   : > { %s1232_s28 = scalar_select %p26_p13, %s1073_s17, %s28_s11  }
  0x40   : > { %p37_p1 = por %p36_p2, %p35_p9  ;;  %p1432_p4 = scmp.eq.s32.totalorder %s1138_s19, 1 }
  0x41   : > { %p838_p8 = scmp.lt.s32.totalorder %s1077_s18, 2  ;;  %s179_s13 = sand.u32 1, %s1073_s17  }
  0x42   : > { %p1236_p6 = por %p1432_p4, %p35_p9  ;;  %s775_s14 = sshll.u32 %s179_s13, 3 }
  0x43   : > { %s791_s20 = sshll.u32 %s1077_s18, 7  ;;  %s183_s30 = scalar_lea.vmem [#allocation4], %s775_s14 }
  0x44   : > { %s1246_s27 = scalar_lea.hbm %s1420_s0, %s791_s20  ;;  %s191_s5 = sshll.u32 %s183_s30, 4  ;;  %s1248_s5 = int_to_ptr.vmem [resolvable:$true] %s191_s5 }
  0x45   : > { %p1250_p11 = pnand %p838_p8, %p37_p1  ;;  %s180_s7 = scalar_lea.sflag [#allocation5], %s179_s13 }
  0x46   : > { %s977_s8 = scalar_lea.hbm %s1246_s27, 128  ;;  %s982_s10 = scalar_lea.hbm %s1420_s0, 256 }
  0x47   : > { %p978_p12 = scmp.ne.s32.totalorder %s1246_s27, %s977_s8  ;;  %p979_p0 = pneg %p1250_p11 }
  0x48   : > { %p983_p7 = scmp.lt.u32.totalorder %s1246_s27, %s1420_s0  ;;  %p984_p10 = scmp.lt.u32.totalorder %s982_s10, %s977_s8 }
  0x49   : > { %p980_p3 = pnand %p979_p0, %p978_p12  ;;  %p986_p9 = scmp.lt.u32.totalorder %s977_s8, %s1246_s27 }
  0x4a   : > { %p985_p13 = por %p984_p10, %p983_p7 }
  0x4b   : > { %p981_p5 = pneg %p980_p3 }
  0x4c   : > { %p987_p2 = por %p986_p9, %p985_p13 }
  0x4e   : > { %p988_p1 = pnand %p987_p2, %p981_p5 }
  0x50   : > { %991 = shalt.err (!%p988_p1)
}
  0x51   : > { %s992_s13 = scalar_lea.vmem %s1248_s5, 128  ;;  %s1081_s20 = smov [#allocation4]  }
  0x52   : > { %p993_p4 = scmp.ne.s32.totalorder %s1248_s5, %s992_s13  ;;  %s997_s24 = sshll.u32 %s1081_s20, 4  ;;  %s998_s24 = int_to_ptr.vmem [resolvable:$false] %s997_s24 }
  0x53   : > { %s999_s26 = scalar_lea.vmem %s998_s24, 256  ;;  %p1000_p3 = scmp.lt.s32.totalorder %s1248_s5, %s998_s24 }
  0x54   : > { %p995_p8 = pnand %p993_p4, %p979_p0  ;;  %p1001_p7 = scmp.lt.s32.totalorder %s999_s26, %s992_s13 }
  0x56   : > { %p996_p12 = pneg %p995_p8  ;;  %p1002_p10 = por %p1001_p7, %p1000_p3 }
  0x58   : > { %p1003_p13 = pnand %p1002_p10, %p996_p12 }
  0x5a   : > { %1006 = shalt.err (!%p1003_p13)
}
  0x5b   : > { %831 = dma.hbm_to_vmem [thread:$0]  (!%p1250_p11), %s1246_s27, 128, %s1248_s5, %s180_s7  }
  0x5c   : > { %p1435_p5 = scmp.ne.s32.totalorder %s1430_s23, 0 }
  0x5d   : > { %s1282_s30 = sand.u32 (!%p1435_p5), 1, %s1069_s16   ;;  %p1436_p0 = scmp.ne.s32.totalorder (!%p1435_p5), %s1428_s21, 0 }
  0x5e   : > { %200 = sbr.rel (%p1435_p5) target bundleno = 824 (0x338), region = 36  ;;  %s779_s8 = sshll.u32 (!%p1435_p5), %s1282_s30, 3 }
  0x5f   : > { %s203_s25 = scalar_lea.sflag (!%p1435_p5), [#allocation5], %s1282_s30  ;;  %s206_s9 = scalar_lea.vmem (!%p1435_p5), [#allocation4], %s779_s8 }
  0x65   : > { %1052 = dma.done.wait (%p1436_p0), %s203_s25, 128  }
  0x66   : > { %1054 = vsyncadd (%p1436_p0), %s203_s25, 4294967168  ;;  %p1437_p9 = scmp.eq.s32.totalorder %s1138_s19, 0 }
  0x68   : > { %1056 = dma.done.wait (%p1437_p9), [#allocation8], 256   ;;  %p1438_p11 = pmov %p1437_p9 }
  0x69   : > { %v256_v0 = vlaneseq  ;;  %v1082_v1 = vmov 0.0   ;;  %v783_v5 = vld [vmem:[%s1423_s3 + $0x1] ss:$2 sm:$0x3]  ;;  %s1083_s6 = smov 113   ;;  %s1084_s7 = smov 111  }
  0x6a   : > { %1058 = vsyncadd (%p1438_p11), [#allocation8], 4294967040  ;;  %241 = vst [vmem:[#allocation2 + $0x8] sm:$0xf0] %v1082_v1  ;;  %579 = vmatprep.mubr.f32.mxu0 %v1082_v1  ;;  %657 = vmatprep.mubr.f32.mxu1 %v1082_v1  ;;  %v243_v9 = vld [vmem:[%s206_s9] sm:$0xff]  ;;  %s1085_s10 = smov 127  }
  0x6b   : > { %242 = vst [vmem:[#allocation2 + $0x10] sm:$0xf0] %v1082_v1  ;;  %v257_v2 = vshrl.u32 %v256_v0, 7  ;;  %v249_v6 = vld [vmem:[%s1423_s3] ss:$2 sm:$0x3]  ;;  %v245_v10 = vcombine.high %v243_v9, %v243_v9 }
  0x6c   : > { %247 = vst [vmem:[#allocation2 + $0x8] sm:$0xf] %v243_v9  ;;  %s1086_s11 = smov 1   ;;  %s1087_s14 = smov 15   ;;  %vm268_vm0 = vcmask 908288   ;;  %vm327_vm1 = vcmask 924672  }
  0x6d   : > { %v258_v3 = vsub.s32 0, %v257_v2  ;;  %v262_v4 = vsub.s32 1, %v257_v2  ;;  %248 = vst [vmem:[#allocation2 + $0x10] sm:$0xf] %v245_v10  ;;  %s1088_s13 = smov 17   ;;  %s1089_s20 = smov 16  }
  0x6e   : > { %vm358_vm2 = vcmask 1039360   ;;  %vm375_vm3 = vcmask 7168   ;;  %vm344_vm4 = vcmask 121856   ;;  %vm285_vm5 = vcmask 138240   ;;  %s1090_s24 = smov 112   ;;  %s782_s26 = sshll.u32 %s1282_s30, 4 }
  0x6f   : > { %v318_v7 = vrot.slane %v783_v5, %v258_v3  ;;  %v259_v8 = vrot.slane %v249_v6, %v258_v3  ;;  %v322_v11 = vrot.slane %v783_v5, %v262_v4  ;;  %v263_v12 = vrot.slane %v249_v6, %v262_v4  ;;  %s238_s8 = scalar_lea.vmem [#allocation10], %s782_s26  ;;  %s792_s9 = sshll.u32 %s1138_s19, 8 }
  0x70   : > { %vm304_vm6 = vcmask 130048   ;;  %vm456_vm7 = vcmask 916480   ;;  %vm511_vm8 = vcmask 588800   ;;  %vm589_vm9 = vcmask 64512   ;;  %s681_s25 = sshll.u32 %s238_s8, 4  ;;  %s1378_s27 = scalar_lea.hbm %s1424_s4, %s792_s9  ;;  %s1373_s25 = int_to_ptr.vmem [resolvable:$true] %s681_s25 }
  0x71   : > { %323 = vrot.lane.b32.xlu1 %v318_v7, %s1083_s6  ;;  %264 = vrot.lane.b32.xlu0 %v259_v8, %s1084_s7  ;;  %s667_s5 = scalar_lea.sflag [#allocation6], %s1282_s30  ;;  %s1091_s19 = smov [#allocation10]  }
  0x73   : > { %v1314_v13 = vld [vmem:[#allocation2 + $0x8] sm:$0xff] }
  0x74   : > { %v1316_v14 = vld [vmem:[#allocation2 + $0x10] sm:$0xff] }
  0x75   : > { %325 = vrot.lane.b32.xlu1 %v322_v11, %s1083_s6  ;;  %266 = vrot.lane.b32.xlu0 %v263_v12, %s1084_s7  ;;  %v885_v15 = vpack.i.bf16 %v1316_v14, %v1314_v13  ;;  %v905_v47 = vpack.i.bf16 %v1082_v1, %v1316_v14 }
  0x79   : > { %356 = vrot.lane.b32.xlu1 %v263_v12, %s1085_s10  ;;  %354 = vrot.lane.b32.xlu0 %v259_v8, %s1085_s10 }
  0x7d   : > { %391 = vrot.lane.b32.xlu1 %v322_v11, %s1086_s11  ;;  %389 = vrot.lane.b32.xlu0 %v318_v7, %s1086_s11 }
  0x81   : > { %420 = vrot.lane.b32.xlu1 %v263_v12, %s1087_s14  ;;  %418 = vrot.lane.b32.xlu0 %v259_v8, %s1087_s14 }
  0x85   : > { %468 = vrot.lane.b32.xlu1 %v322_v11, %s1088_s13  ;;  %466 = vrot.lane.b32.xlu0 %v318_v7, %s1088_s13 }
  0x89   : > { %886 = vrot.lane.b32.xlu1 %v885_v15, %s1089_s20 }
  0x8d   : > { %298 = vrot.lane.b32.xlu1 %v1082_v1, %s1089_s20 }
  0xe3   : > { %v324_v16 = vpop.permute.xlu1 %323  ;;  %v265_v17 = vpop.permute.xlu0 %264 }
  0xe4   : > { %v273_v18 = vmul.f32 0.0, %v265_v17  ;;  %v332_v19 = vmul.f32 0.0, %v324_v16 }
  0xe6   : > { %279 = vrot.lane.b32.xlu0 %v273_v18, %s1088_s13 }
  0xe7   : > { %v326_v20 = vpop.permute.xlu1 %325  ;;  %v267_v21 = vpop.permute.xlu0 %266 }
  0xe8   : > { %v269_v22 = vsel %vm268_vm0, %v265_v17, %v267_v21  ;;  %v275_v23 = vmul.f32 %v1316_v14, %v267_v21  ;;  %v328_v24 = vsel %vm327_vm1, %v324_v16, %v326_v20  ;;  %v334_v26 = vmul.f32 %v326_v20, %v1316_v14 }
  0xe9   : > { %v274_v25 = vmul.f32 %v1314_v13, %v269_v22  ;;  %v333_v30 = vmul.f32 %v328_v24, %v1314_v13 }
  0xea   : > { %338 = vrot.lane.b32.xlu0 %v332_v19, %s1087_s14 }
  0xeb   : > { %v890_v27 = vpack.i.bf16 %v275_v23, %v274_v25  ;;  %v357_v28 = vpop.permute.xlu1 %356  ;;  %v355_v29 = vpop.permute.xlu0 %354  ;;  %v895_v38 = vpack.i.bf16 %v334_v26, %v333_v30 }
  0xec   : > { %v365_v31 = vmul.f32 %v357_v28, %v1316_v14  ;;  %v359_v32 = vsel %vm358_vm2, %v355_v29, %v357_v28  ;;  %v363_v33 = vmul.f32 0.0, %v355_v29 }
  0xed   : > { %v364_v34 = vmul.f32 %v359_v32, %v1314_v13 }
  0xee   : > { %369 = vrot.lane.b32.xlu1 %v363_v33, %s1086_s11  ;;  %891 = vrot.lane.b32.xlu0 %v890_v27, %s1088_s13 }
  0xef   : > { %v392_v35 = vpop.permute.xlu1 %391  ;;  %v390_v36 = vpop.permute.xlu0 %389  ;;  %v900_v37 = vpack.i.bf16 %v365_v31, %v364_v34 }
  0xf0   : > { %v393_v39 = vsel %vm375_vm3, %v390_v36, %v392_v35  ;;  %v399_v42 = vmul.f32 0.0, %v392_v35  ;;  %v397_v43 = vmul.f32 %v390_v36, %v1314_v13 }
  0xf1   : > { %v398_v44 = vmul.f32 %v393_v39, %v1316_v14 }
  0xf2   : > { %901 = vrot.lane.b32.xlu1 %v900_v37, %s1086_s11  ;;  %896 = vrot.lane.b32.xlu0 %v895_v38, %s1087_s14 }
  0xf3   : > { %v421_v40 = vpop.permute.xlu1 %420  ;;  %v419_v41 = vpop.permute.xlu0 %418  ;;  %v910_v50 = vpack.i.bf16 %v399_v42, %v398_v44 }
  0xf4   : > { %v426_v45 = vmul.f32 %v419_v41, %v1314_v13  ;;  %v422_v46 = vsel %vm344_vm4, %v419_v41, %v421_v40  ;;  %v428_v48 = vmul.f32 0.0, %v421_v40 }
  0xf5   : > { %v427_v49 = vmul.f32 %v422_v46, %v1316_v14 }
  0xf6   : > { %403 = vrot.lane.b32.xlu1 %v397_v43, %s1085_s10  ;;  %432 = vrot.lane.b32.xlu0 %v426_v45, %s1083_s6 }
  0xf7   : > { %v469_v51 = vpop.permute.xlu1 %468  ;;  %v467_v52 = vpop.permute.xlu0 %466  ;;  %v915_v54 = vpack.i.bf16 %v428_v48, %v427_v49  ;;  %v492_v49 = vld [vmem:[#allocation7] sm:$0xff] }
  0xf8   : > { %v470_v53 = vsel %vm285_vm5, %v467_v52, %v469_v51  ;;  %v476_v55 = vmul.f32 0.0, %v469_v51  ;;  %v474_v57 = vmul.f32 %v467_v52, %v1314_v13 }
  0xf9   : > { %v475_v56 = vmul.f32 %v470_v53, %v1316_v14 }
  0xfa   : > { %906 = vrot.lane.b32.xlu1 %v905_v47, %s1090_s24  ;;  %911 = vrot.lane.b32.xlu0 %v910_v50, %s1085_s10 }
  0xfb   : > { %v887_v58 = vpop.permute.xlu1 %886 }
  0xfc   : > { %v889_v62 = vunpack.i.h.bf16 %v887_v58  ;;  %v888_v63 = vunpack.i.l.bf16 %v887_v58 }
  0xfe   : > { %450 = vrot.lane.b32.xlu1 %v1314_v13, %s1090_s24  ;;  %916 = vrot.lane.b32.xlu0 %v915_v54, %s1083_s6  ;;  %v306_v6 = vsel %vm304_vm6, %v888_v63, %v889_v62  ;;  %v588_v54 = vld [vmem:[#allocation9] sm:$0xff]  ;;  %s1007_s6 = scalar_lea.vmem %s1373_s25, 256 }
  0xff   : > { %v299_v60 = vpop.permute.xlu1 %298  ;;  %p1008_p2 = scmp.ne.s32.totalorder %s1373_s25, %s1007_s6 }
 0x100   : > { %v305_v4 = vsel %vm304_vm6, %v299_v60, %v888_v63 }
 0x101   : > { %p1009_p1 = pnand %p1008_p2, %p1236_p6 }
 0x102   : > { %484 = vrot.lane.b32.xlu1 %v476_v55, %s1084_s7  ;;  %482 = vrot.lane.b32.xlu0 %v475_v56, %s1084_s7 }
 0x103   : > { %p1010_p4 = pneg %p1009_p1 }
 0x106   : > { %480 = vrot.lane.b32.xlu0 %v474_v57, %s1084_s7  ;;  %s1011_s7 = sshll.u32 %s1091_s19, 4  ;;  %s1012_s7 = int_to_ptr.vmem [resolvable:$false] %s1011_s7 }
 0x107   : > { %s1013_s10 = scalar_lea.vmem %s1012_s7, 512  ;;  %p1014_p8 = scmp.lt.s32.totalorder %s1373_s25, %s1012_s7 }
 0x108   : > { %p1015_p12 = scmp.lt.s32.totalorder %s1013_s10, %s1007_s6 }
 0x10a   : > { %p1016_p3 = por %p1015_p12, %p1014_p8 }
 0x10c   : > { %p1017_p7 = pnand %p1016_p3, %p1010_p4 }
 0x158   : > { %v280_v59 = vpop.permute.xlu0 %279 }
 0x15c   : > { %v339_v61 = vpop.permute.xlu0 %338 }
 0x160   : > { %v370_v0 = vpop.permute.xlu1 %369  ;;  %v892_v1 = vpop.permute.xlu0 %891 }
 0x161   : > { %v894_v2 = vunpack.i.h.bf16 %v892_v1  ;;  %v893_v3 = vunpack.i.l.bf16 %v892_v1 }
 0x163   : > { %v287_v5 = vsel %vm285_vm5, %v893_v3, %v894_v2  ;;  %v286_v7 = vsel %vm285_vm5, %v280_v59, %v893_v3 }
 0x164   : > { %v902_v8 = vpop.permute.xlu1 %901  ;;  %v897_v9 = vpop.permute.xlu0 %896  ;;  %v793_v10 = vpack.c.bf16 %v306_v6, %v287_v5  ;;  %v795_v11 = vpack.c.bf16 %v305_v4, %v286_v7 }
 0x165   : > { %v904_v12 = vunpack.i.h.bf16 %v902_v8  ;;  %v903_v15 = vunpack.i.l.bf16 %v902_v8  ;;  %v899_v16 = vunpack.i.h.bf16 %v897_v9  ;;  %v898_v17 = vunpack.i.l.bf16 %v897_v9 }
 0x166   : > { %794 = vmatprep.subr.bf16.mxu0 %v793_v10 }
 0x167   : > { %796 = vmatpush1.bf16.msra.mxu0 %v795_v11  ;;  %v346_v18 = vsel %vm344_vm4, %v898_v17, %v899_v16  ;;  %v377_v19 = vsel %vm375_vm3, %v903_v15, %v904_v12  ;;  %v345_v20 = vsel %vm344_vm4, %v339_v61, %v898_v17  ;;  %v376_v21 = vsel %vm375_vm3, %v370_v0, %v903_v15 }
 0x168   : > { %v404_v22 = vpop.permute.xlu1 %403  ;;  %v433_v23 = vpop.permute.xlu0 %432  ;;  %v797_v24 = vpack.c.bf16 %v377_v19, %v346_v18  ;;  %v799_v25 = vpack.c.bf16 %v376_v21, %v345_v20 }
 0x16a   : > { %798 = vmatprep.subr.bf16.mxu0 %v797_v24 }
 0x16b   : > { %800 = vmatpush1.bf16.msra.mxu0 %v799_v25 }
 0x16c   : > { %v907_v26 = vpop.permute.xlu1 %906  ;;  %v912_v27 = vpop.permute.xlu0 %911 }
 0x16d   : > { %v909_v28 = vunpack.i.h.bf16 %v907_v26  ;;  %v908_v29 = vunpack.i.l.bf16 %v907_v26  ;;  %v914_v30 = vunpack.i.h.bf16 %v912_v27  ;;  %v913_v31 = vunpack.i.l.bf16 %v912_v27 }
 0x16f   : > { %v410_v32 = vsel %vm358_vm2, %v913_v31, %v914_v30  ;;  %v409_v33 = vsel %vm358_vm2, %v404_v22, %v913_v31  ;;  %v458_v41 = vsel %vm456_vm7, %v908_v29, %v909_v28 }
 0x170   : > { %v451_v34 = vpop.permute.xlu1 %450  ;;  %v917_v35 = vpop.permute.xlu0 %916  ;;  %v801_v36 = vpack.c.bf16 %v410_v32, %v1316_v14  ;;  %v803_v37 = vpack.c.bf16 %v409_v33, %v1314_v13 }
 0x171   : > { %v457_v38 = vsel %vm456_vm7, %v451_v34, %v908_v29  ;;  %v919_v39 = vunpack.i.h.bf16 %v917_v35  ;;  %v918_v40 = vunpack.i.l.bf16 %v917_v35 }
 0x172   : > { %802 = vmatprep.subr.bf16.mxu0 %v801_v36 }
 0x173   : > { %804 = vmatpush1.bf16.msra.mxu0 %v803_v37  ;;  %v439_v42 = vsel %vm327_vm1, %v918_v40, %v919_v39  ;;  %v438_v43 = vsel %vm327_vm1, %v433_v23, %v918_v40 }
 0x174   : > { %v485_v44 = vpop.permute.xlu1 %484  ;;  %v483_v45 = vpop.permute.xlu0 %482  ;;  %v805_v46 = vpack.c.bf16 %v458_v41, %v439_v42  ;;  %v807_v47 = vpack.c.bf16 %v457_v38, %v438_v43 }
 0x175   : > { %v487_v14 = vsel %vm268_vm0, %v483_v45, %v485_v44 }
 0x176   : > { %806 = vmatprep.subr.bf16.mxu0 %v805_v46 }
 0x177   : > { %808 = vmatpush1.bf16.msra.mxu0 %v807_v47 }
 0x178   : > { %v481_v48 = vpop.permute.xlu0 %480  ;;  %531 = vmatprep.subr.mxu0 %v487_v14 }
 0x179   : > { %v486_v13 = vsel %vm268_vm0, %v481_v48, %v483_v45 }
 0x17b   : > { %532 = vmatpush1.msra.mxu0 %v486_v13 }
 0x17c   : > { %784 = vmatmul.mubr.msk.f32.vlgmr.msra.gmra.mrb[0].mxu0 %vm511_vm8, %v492_v49 }
 0x24f   : > { %v581_v50 = vpop.f32.mrb[0].mxu0 }
 0x250   : > { %v583_v51 = vpop.f32.mrb[1].mxu0  ;;  %v586_v53 = vmax.f32 %v581_v50, 0.0 }
 0x251   : > { %v587_v52 = vmax.f32 %v583_v51, 0.0 }
 0x253   : > { %593 = vmatprep.subr.mxu1 %v587_v52 }
 0x254   : > { %594 = vmatpush1.msra.mxu1 %v586_v53 }
 0x255   : > { %785 = vmatmul.mubr.msk.f32.vlgmr.msra.gmra.mrb[0].mxu1 %vm589_vm9, %v588_v54 }
 0x328   : > { %v659_v55 = vpop.f32.mrb[0].mxu1 }
 0x329   : > { %664 = vst [vmem:[%s238_s8] sm:$0xff] %v659_v55  ;;  %v661_v56 = vpop.f32.mrb[1].mxu1 }
 0x32a   : > { %665 = vst [vmem:[%s238_s8 + $0x8] sm:$0xff] %v661_v56 }
 0x32b   : > { %1020 = shalt.err (!%p1017_p7)
}
 0x32c   : > { %s1021_s30 = scalar_lea.hbm %s1378_s27, 256  ;;  %s1025_s13 = scalar_lea.hbm %s1424_s4, 512 }
 0x32d   : > { %p1022_p10 = scmp.ne.s32.totalorder %s1378_s27, %s1021_s30  ;;  %p1026_p0 = scmp.lt.u32.totalorder %s1378_s27, %s1424_s4 }
 0x32e   : > { %p1027_p9 = scmp.lt.u32.totalorder %s1025_s13, %s1021_s30  ;;  %p1029_p2 = scmp.lt.u32.totalorder %s1021_s30, %s1378_s27 }
 0x32f   : > { %p1023_p13 = pnand %p1022_p10, %p1236_p6 }
 0x330   : > { %p1028_p11 = por %p1027_p9, %p1026_p0 }
 0x331   : > { %p1024_p5 = pneg %p1023_p13 }
 0x332   : > { %p1030_p1 = por %p1029_p2, %p1028_p11 }
 0x334   : > { %p1031_p4 = pnand %p1030_p1, %p1024_p5 }
 0x336   : > { %1034 = shalt.err (!%p1031_p4)
}
 0x337   : > { %819 = dma.vmem_to_hbm [thread:$0]  (%p1236_p6), %s1373_s25, 256, %s1378_s27, %s667_s5  }
 0x338 PF: > { %s693_s26 = sand.u32 1, %s1065_s15   ;;  %p1439_p8 = scmp.ne.s32.totalorder %s1429_s22, 0 }
 0x339   : > { %p1440_p12 = scmp.ge.s32.totalorder %s1077_s18, 2  ;;  %s694_s8 = scalar_lea.sflag [#allocation6], %s693_s26 }
 0x33b   : > { %p833_p3 = pnand %p1440_p12, %p1439_p8 }
 0x33d   : > { %1060 = dma.done.wait (!%p833_p3), %s694_s8, 256  }
 0x33e   : > { %1062 = vsyncadd (!%p833_p3), %s694_s8, 4294967040  ;;  %p18_p7 = scmp.ge.s32.totalorder %s1173_s29, 4   ;;  %s1441_s15 = smov %s1069_s16 }
 0x33f   : > { %s1442_s16 = smov %s1073_s17  ;;  %s1443_s17 = smov %s1232_s28 }
 0x340   : > { %s1444_s18 = smov %s1173_s29  ;;  %20 = sbr.rel (!%p18_p7) target bundleno = 6 (0x6), region = 90 }
 0x347   :  { %699 = vsyncpa [#allocation5], 1 }
 0x348   :  { %701 = vsyncpa [#allocation5 + $0x1], 1 }
 0x349   :  { %702 = vsyncpa [#allocation8], 1 }
 0x34a   :  { %703 = vsyncpa [#allocation6], 1 }
 0x34b   :  { %705 = vsyncpa [#allocation6 + $0x1], 1 }

</bundles_post_ra>
